<compile_context>
chip_gen: v5e
topology: v5e:2x2
jax: 0.10.0
libtpu: 0.0.40
codegen_flags: <defaults>
</compile_context>

<pallas_src>
import functools

import jax
import jax.numpy as jnp
from jax import lax
from jax.experimental import pallas as pl
from jax.experimental.pallas import tpu as pltpu

_LANES = 128


def dice_loss_kernel(pred_ref, tgt_ref, out_ref, inter_acc, union_acc, *,
                     smooth, needs_mask):
    s = pl.program_id(1)

    @pl.when(s == 0)
    def _init():
        inter_acc[...] = jnp.zeros_like(inter_acc)
        union_acc[...] = jnp.zeros_like(union_acc)

    x = pred_ref[0].astype(jnp.float32)            # (C, S, 128), cast in-kernel
    t = tgt_ref[0]                                 # (S, 128) int32
    c = x.shape[0]

    # Numerically-stable softmax over the class axis (axis 0): elementwise
    # max/sum across class slabs, no cross-lane reductions.
    m = jnp.max(x, axis=0, keepdims=True)          # (1, S, 128)
    e = jnp.exp(x - m)                             # EUP
    denom = jnp.sum(e, axis=0, keepdims=True)      # (1, S, 128)
    # EUP approx reciprocal + one Newton step (~f32-accurate), instead of a
    # per-pixel VALU divide.
    r = pl.reciprocal(denom, approx=True)
    r = r * (2.0 - denom * r)
    sm = e * r                                     # (C, S, 128)

    class_ids = lax.broadcasted_iota(jnp.int32, x.shape, 0)
    match = t[None, :, :] == class_ids             # one-hot mask (C, S, 128)
    onehot = match.astype(jnp.float32)

    if needs_mask:
        # Padded pixels carry target == -1: exclude their softmax mass.
        valid = (t >= 0)[None, :, :]
        sm_valid = jnp.where(valid, sm, 0.0)
    else:
        sm_valid = sm

    # Pure elementwise accumulation; cross-lane reduce deferred to finalize.
    inter_acc[...] += jnp.where(match, sm, 0.0)
    union_acc[...] += sm_valid + onehot

    @pl.when(s == pl.num_programs(1) - 1)
    def _finalize():
        inter = jnp.sum(jnp.sum(inter_acc[...], axis=-1), axis=-1,
                        keepdims=True)                           # (C, 1)
        union = jnp.sum(jnp.sum(union_acc[...], axis=-1), axis=-1,
                        keepdims=True)                           # (C, 1)
        dice = (2.0 * inter + smooth) / (union + smooth)         # (C, 1) exact
        out_ref[0] = jnp.broadcast_to(dice, (c, out_ref.shape[2]))


def _choose_tiling(hw, c, itemsize):
    """Pick (rows per tile, padded total rows); a row is 128 pixels."""
    rows = -(-hw // _LANES)                                   # ceil(HW / 128)
    # ~4 MiB per pred tile (x2 pipeline buffers ~ 8 MiB), capped at 64 rows
    # (8192 pixels) -- well inside v7x's 64 MiB VMEM for any realistic C.
    budget_rows = max(8, (4 * 1024 * 1024) // (c * _LANES * itemsize))
    cap = min(64, budget_rows)
    if rows <= cap:
        return rows, rows                                     # one tile / image
    s_tile = max(8, (cap // 8) * 8)                           # multiple of 8
    padded_rows = -(-rows // s_tile) * s_tile
    return s_tile, padded_rows


def dice_loss(pred, target, smooth=1e-6):
    """pred: (N, C, H, W) float, target: (N, H, W) int -> scalar loss."""
    N, C, H, W = pred.shape
    HW = H * W
    itemsize = jnp.dtype(pred.dtype).itemsize
    s_tile, padded_rows = _choose_tiling(HW, C, itemsize)
    hw_pad = padded_rows * _LANES
    num_tiles = padded_rows // s_tile
    needs_mask = hw_pad != HW

    pred_flat = pred.reshape(N, C, HW)             # keep native dtype (bf16 ok)
    tgt_flat = target.reshape(N, HW).astype(jnp.int32)
    if needs_mask:
        pad = hw_pad - HW
        pred_flat = jnp.pad(pred_flat, ((0, 0), (0, 0), (0, pad)))
        tgt_flat = jnp.pad(tgt_flat, ((0, 0), (0, pad)), constant_values=-1)

    pred4 = pred_flat.reshape(N, C, padded_rows, _LANES)
    tgt3 = tgt_flat.reshape(N, padded_rows, _LANES)

    kernel = functools.partial(dice_loss_kernel, smooth=float(smooth),
                               needs_mask=needs_mask)

    out = pl.pallas_call(
        kernel,
        out_shape=jax.ShapeDtypeStruct((N, C, _LANES), jnp.float32),
        grid_spec=pltpu.PrefetchScalarGridSpec(
            num_scalar_prefetch=0,
            grid=(N, num_tiles),
            in_specs=[
                pl.BlockSpec((1, C, s_tile, _LANES), lambda b, s: (b, 0, s, 0)),
                pl.BlockSpec((1, s_tile, _LANES), lambda b, s: (b, s, 0)),
            ],
            out_specs=pl.BlockSpec((1, C, _LANES), lambda b, s: (b, 0, 0)),
            scratch_shapes=[
                pltpu.VMEM((C, s_tile, _LANES), jnp.float32),  # inter accum
                pltpu.VMEM((C, s_tile, _LANES), jnp.float32),  # union accum
            ],
        ),
        compiler_params=pltpu.CompilerParams(
            dimension_semantics=("parallel", "arbitrary")),
        # Note: if an xprof trace on a given generation shows exposed DMA,
        # add pipeline_mode=pl.Buffered(3) to the pred BlockSpec.
    )(pred4, tgt3)

    dice = out[:, :, 0]                            # (N, C) per-sample dice
    return 1.0 - jnp.mean(dice)


def dice_loss_ref(pred, target, smooth=1e-6):
    """Pure-JAX reference matching the PyTorch module."""
    N, C, H, W = pred.shape
    onehot = jax.nn.one_hot(target, C, dtype=jnp.float32)        # (N, H, W, C)
    onehot = jnp.transpose(onehot, (0, 3, 1, 2))                  # (N, C, H, W)
    sm = jax.nn.softmax(pred.astype(jnp.float32), axis=1)
    inter = jnp.sum(sm * onehot, axis=(2, 3))
    union = jnp.sum(sm, axis=(2, 3)) + jnp.sum(onehot, axis=(2, 3))
    dice = (2.0 * inter + smooth) / (union + smooth)
    return 1.0 - jnp.mean(dice)


if __name__ == "__main__":
    key = jax.random.PRNGKey(0)
    kp, kt = jax.random.split(key)

    N, C, H, W = 2, 4, 16, 16
    pred = jax.random.normal(kp, (N, C, H, W), dtype=jnp.float32)
    target = jax.random.randint(kt, (N, H, W), 0, C, dtype=jnp.int32)

    loss = jax.block_until_ready(dice_loss(pred, target))
    ref = jax.block_until_ready(dice_loss_ref(pred, target))
    assert jnp.allclose(loss, ref, atol=1e-5, rtol=1e-5), (loss, ref)

    print("KERNEL_OK")
</pallas_src>

<mosaic_0001>
module attributes {stable_mosaic.version = 11 : i64} {
  func.func @dice_loss_kernel(%arg0: i32, %arg1: i32, %arg2: memref<1x4x2x128xf32, #tpu.memory_space<vmem>>, %arg3: memref<1x2x128xi32, #tpu.memory_space<vmem>>, %arg4: memref<1x4x128xf32, #tpu.memory_space<vmem>>, %arg5: memref<4x2x128xf32, #tpu.memory_space<vmem>>, %arg6: memref<4x2x128xf32, #tpu.memory_space<vmem>>) attributes {dimension_semantics = [#tpu.dimension_semantics<parallel>, #tpu.dimension_semantics<arbitrary>], iteration_bounds = array<i64: 2, 1>, scalar_prefetch = 0 : i64, scratch_operands = 2 : i64, tpu.core_type = #tpu.core_type<tc>, window_params = [{transform_indices = @transform_0, window_bounds = array<i64: 1, 4, 2, 128>}, {transform_indices = @transform_1, window_bounds = array<i64: 1, 2, 128>}, {transform_indices = @transform_2, window_bounds = array<i64: 1, 4, 128>}]} {
    %c0_i32 = arith.constant 0 : i32
    %0 = arith.cmpi eq, %arg1, %c0_i32 : i32
    %1 = arith.extui %0 : i1 to i32
    %c0_i32_0 = arith.constant 0 : i32
    %2 = arith.cmpi ne, %1, %c0_i32_0 : i32
    scf.if %2 {
      %cst_24 = arith.constant 0.000000e+00 : f32
      %39 = vector.broadcast %cst_24 : f32 to vector<4x2x128xf32>
      %c0_25 = arith.constant 0 : index
      %c0_26 = arith.constant 0 : index
      %c0_27 = arith.constant 0 : index
      %40 = vector.load %arg5[%c0_25, %c0_26, %c0_27] : memref<4x2x128xf32, #tpu.memory_space<vmem>>, vector<4x2x128xf32>
      tpu.vector_store %arg5[%c0_25, %c0_26, %c0_27], %39 {strides = array<i32>} : memref<4x2x128xf32, #tpu.memory_space<vmem>>, vector<4x2x128xf32>,
      %cst_28 = arith.constant 0.000000e+00 : f32
      %41 = vector.broadcast %cst_28 : f32 to vector<4x2x128xf32>
      %c0_29 = arith.constant 0 : index
      %c0_30 = arith.constant 0 : index
      %c0_31 = arith.constant 0 : index
      %42 = vector.load %arg6[%c0_29, %c0_30, %c0_31] : memref<4x2x128xf32, #tpu.memory_space<vmem>>, vector<4x2x128xf32>
      tpu.vector_store %arg6[%c0_29, %c0_30, %c0_31], %41 {strides = array<i32>} : memref<4x2x128xf32, #tpu.memory_space<vmem>>, vector<4x2x128xf32>,
    } else {
    }
    %c0 = arith.constant 0 : index
    %c0_1 = arith.constant 0 : index
    %c0_2 = arith.constant 0 : index
    %c0_3 = arith.constant 0 : index
    %3 = vector.load %arg2[%c0, %c0_1, %c0_2, %c0_3] : memref<1x4x2x128xf32, #tpu.memory_space<vmem>>, vector<1x4x2x128xf32>
    %4 = vector.shape_cast %3 : vector<1x4x2x128xf32> to vector<4x2x128xf32>
    %c0_4 = arith.constant 0 : index
    %c0_5 = arith.constant 0 : index
    %c0_6 = arith.constant 0 : index
    %5 = vector.load %arg3[%c0_4, %c0_5, %c0_6] : memref<1x2x128xi32, #tpu.memory_space<vmem>>, vector<1x2x128xi32>
    %6 = vector.shape_cast %5 : vector<1x2x128xi32> to vector<2x128xi32>
    %cst = arith.constant dense<0xFF800000> : vector<2x128xf32>
    %7 = vector.multi_reduction <maximumf>, %4, %cst [0] : vector<4x2x128xf32> to vector<2x128xf32>
    %8 = vector.shape_cast %7 : vector<2x128xf32> to vector<1x2x128xf32>
    %9 = vector.broadcast %8 : vector<1x2x128xf32> to vector<4x2x128xf32>
    %10 = arith.subf %4, %9 : vector<4x2x128xf32>
    %11 = math.exp %10 : vector<4x2x128xf32>
    %cst_7 = arith.constant dense<0.000000e+00> : vector<2x128xf32>
    %12 = vector.multi_reduction <add>, %11, %cst_7 [0] : vector<4x2x128xf32> to vector<2x128xf32>
    %13 = vector.shape_cast %12 : vector<2x128xf32> to vector<1x2x128xf32>
    %14 = tpu.reciprocal %13 {approx = true} : vector<1x2x128xf32> -> vector<1x2x128xf32>
    %15 = arith.mulf %13, %14 : vector<1x2x128xf32>
    %cst_8 = arith.constant 2.000000e+00 : f32
    %16 = vector.broadcast %cst_8 : f32 to vector<1x2x128xf32>
    %17 = arith.subf %16, %15 : vector<1x2x128xf32>
    %18 = arith.mulf %14, %17 : vector<1x2x128xf32>
    %19 = vector.broadcast %18 : vector<1x2x128xf32> to vector<4x2x128xf32>
    %20 = arith.mulf %11, %19 : vector<4x2x128xf32>
    %21 = tpu.iota {dimensions = array<i32: 0>} : vector<4x2x128xi32>
    %22 = vector.shape_cast %6 : vector<2x128xi32> to vector<1x2x128xi32>
    %23 = vector.broadcast %22 : vector<1x2x128xi32> to vector<4x2x128xi32>
    %24 = arith.cmpi eq, %23, %21 : vector<4x2x128xi32>
    %25 = arith.extui %24 : vector<4x2x128xi1> to vector<4x2x128xi32>
    %26 = arith.sitofp %25 : vector<4x2x128xi32> to vector<4x2x128xf32>
    %c0_9 = arith.constant 0 : index
    %c0_10 = arith.constant 0 : index
    %c0_11 = arith.constant 0 : index
    %27 = vector.load %arg5[%c0_9, %c0_10, %c0_11] : memref<4x2x128xf32, #tpu.memory_space<vmem>>, vector<4x2x128xf32>
    %cst_12 = arith.constant 0.000000e+00 : f32
    %28 = vector.broadcast %cst_12 : f32 to vector<4x2x128xf32>
    %29 = arith.select %24, %20, %28 : vector<4x2x128xi1>, vector<4x2x128xf32>
    %30 = arith.addf %27, %29 : vector<4x2x128xf32>
    %c0_13 = arith.constant 0 : index
    %c0_14 = arith.constant 0 : index
    %c0_15 = arith.constant 0 : index
    %31 = vector.load %arg5[%c0_13, %c0_14, %c0_15] : memref<4x2x128xf32, #tpu.memory_space<vmem>>, vector<4x2x128xf32>
    tpu.vector_store %arg5[%c0_13, %c0_14, %c0_15], %30 {strides = array<i32>} : memref<4x2x128xf32, #tpu.memory_space<vmem>>, vector<4x2x128xf32>,
    %c0_16 = arith.constant 0 : index
    %c0_17 = arith.constant 0 : index
    %c0_18 = arith.constant 0 : index
    %32 = vector.load %arg6[%c0_16, %c0_17, %c0_18] : memref<4x2x128xf32, #tpu.memory_space<vmem>>, vector<4x2x128xf32>
    %33 = arith.addf %20, %26 : vector<4x2x128xf32>
    %34 = arith.addf %32, %33 : vector<4x2x128xf32>
    %c0_19 = arith.constant 0 : index
    %c0_20 = arith.constant 0 : index
    %c0_21 = arith.constant 0 : index
    %35 = vector.load %arg6[%c0_19, %c0_20, %c0_21] : memref<4x2x128xf32, #tpu.memory_space<vmem>>, vector<4x2x128xf32>
    tpu.vector_store %arg6[%c0_19, %c0_20, %c0_21], %34 {strides = array<i32>} : memref<4x2x128xf32, #tpu.memory_space<vmem>>, vector<4x2x128xf32>,
    %c0_i32_22 = arith.constant 0 : i32
    %36 = arith.cmpi eq, %arg1, %c0_i32_22 : i32
    %37 = arith.extui %36 : i1 to i32
    %c0_i32_23 = arith.constant 0 : i32
    %38 = arith.cmpi ne, %37, %c0_i32_23 : i32
    scf.if %38 {
      %c0_24 = arith.constant 0 : index
      %c0_25 = arith.constant 0 : index
      %c0_26 = arith.constant 0 : index
      %39 = vector.load %arg5[%c0_24, %c0_25, %c0_26] : memref<4x2x128xf32, #tpu.memory_space<vmem>>, vector<4x2x128xf32>
      %cst_27 = arith.constant dense<0.000000e+00> : vector<4x2xf32>
      %40 = vector.multi_reduction <add>, %39, %cst_27 [2] : vector<4x2x128xf32> to vector<4x2xf32>
      %cst_28 = arith.constant dense<0.000000e+00> : vector<4xf32>
      %41 = vector.multi_reduction <add>, %40, %cst_28 [1] : vector<4x2xf32> to vector<4xf32>
      %42 = vector.shape_cast %41 : vector<4xf32> to vector<4x1xf32>
      %c0_29 = arith.constant 0 : index
      %c0_30 = arith.constant 0 : index
      %c0_31 = arith.constant 0 : index
      %43 = vector.load %arg6[%c0_29, %c0_30, %c0_31] : memref<4x2x128xf32, #tpu.memory_space<vmem>>, vector<4x2x128xf32>
      %cst_32 = arith.constant dense<0.000000e+00> : vector<4x2xf32>
      %44 = vector.multi_reduction <add>, %43, %cst_32 [2] : vector<4x2x128xf32> to vector<4x2xf32>
      %cst_33 = arith.constant dense<0.000000e+00> : vector<4xf32>
      %45 = vector.multi_reduction <add>, %44, %cst_33 [1] : vector<4x2xf32> to vector<4xf32>
      %46 = vector.shape_cast %45 : vector<4xf32> to vector<4x1xf32>
      %cst_34 = arith.constant 2.000000e+00 : f32
      %47 = vector.broadcast %cst_34 : f32 to vector<4x1xf32>
      %48 = arith.mulf %47, %42 : vector<4x1xf32>
      %cst_35 = arith.constant 9.99999997E-7 : f32
      %49 = vector.broadcast %cst_35 : f32 to vector<4x1xf32>
      %50 = arith.addf %48, %49 : vector<4x1xf32>
      %cst_36 = arith.constant 9.99999997E-7 : f32
      %51 = vector.broadcast %cst_36 : f32 to vector<4x1xf32>
      %52 = arith.addf %46, %51 : vector<4x1xf32>
      %53 = arith.divf %50, %52 : vector<4x1xf32>
      %54 = vector.shape_cast %53 : vector<4x1xf32> to vector<4x1xf32>
      %55 = vector.broadcast %54 : vector<4x1xf32> to vector<4x128xf32>
      %c0_37 = arith.constant 0 : index
      %c0_38 = arith.constant 0 : index
      %c0_39 = arith.constant 0 : index
      %56 = vector.load %arg4[%c0_37, %c0_38, %c0_39] : memref<1x4x128xf32, #tpu.memory_space<vmem>>, vector<1x4x128xf32>
      %57 = vector.shape_cast %56 : vector<1x4x128xf32> to vector<4x128xf32>
      %58 = vector.shape_cast %55 : vector<4x128xf32> to vector<1x4x128xf32>
      tpu.vector_store %arg4[%c0_37, %c0_38, %c0_39], %58 {strides = array<i32>} : memref<1x4x128xf32, #tpu.memory_space<vmem>>, vector<1x4x128xf32>,
    } else {
    }
    return
  }
  func.func @transform_0(%arg0: i32, %arg1: i32) -> (i32, i32, i32, i32) {
    %c0_i32 = arith.constant 0 : i32
    %c0_i32_0 = arith.constant 0 : i32
    %c0_i32_1 = arith.constant 0 : i32
    return %arg0, %c0_i32, %arg1, %c0_i32_0 : i32, i32, i32, i32
  }
  func.func @transform_1(%arg0: i32, %arg1: i32) -> (i32, i32, i32) {
    %c0_i32 = arith.constant 0 : i32
    %c0_i32_0 = arith.constant 0 : i32
    return %arg0, %arg1, %c0_i32 : i32, i32, i32
  }
  func.func @transform_2(%arg0: i32, %arg1: i32) -> (i32, i32, i32) {
    %c0_i32 = arith.constant 0 : i32
    %c0_i32_0 = arith.constant 0 : i32
    %c0_i32_1 = arith.constant 0 : i32
    return %arg0, %c0_i32, %c0_i32_0 : i32, i32, i32
  }
}

</mosaic_0001>

<bundles_post_ra>
// kernel: tpu_custom_call.1
= control target key start
LH: loop header
LB: loop body
LE: loop exit
PB: predicated region body
PF: predicated region fallthrough
CT: control target
= control target key end

     0   :  { %7 = vsyncpa [#allocation5], 0  ;;  %s967_s0 = inlined_call_operand.hbm [shape: f32[2,4,2,128], index: 0, kind: input, shape index: {}]   ;;  %s968_s1 = inlined_call_operand.hbm [shape: s32[2,2,128], index: 1, kind: input, shape index: {}]   ;;  %s969_s2 = inlined_call_operand.hbm [shape: f32[2,4,128], index: 2, kind: output, shape index: {}]  }
   0x1   :  { %9 = vsyncpa [#allocation5 + $0x1], 0 }
   0x2   :  { %10 = vsyncpa [#allocation8], 0 }
   0x3   :  { %12 = vsyncpa [#allocation8 + $0x1], 0 }
   0x4   :  { %13 = vsyncpa [#allocation6], 0 }
   0x5   :  { %15 = vsyncpa [#allocation6 + $0x1], 0  ;;  %s797_s9 = smov 0   ;;  %s799_s10 = smov 0  }
   0x6   :  { %s801_s11 = smov 0   ;;  %s803_s12 = smov 0  }
   0x7   :  { %s805_s13 = smov 0   ;;  %s807_s14 = smov 0  }
   0x8 LB: > { %s527_s15 = sadd.s32 4294967295, %s777_s14   ;;  %s528_s16 = sadd.s32 4294967294, %s777_s14   ;;  %s777_s14 = sphi %s807_s14, %s21_s14   ;;  %s773_s13 = sphi %s805_s13, %s979_s13   ;;  %s769_s12 = sphi %s803_s12, %s978_s12   ;;  %s765_s11 = sphi %s801_s11, %s977_s11   ;;  %s761_s10 = sphi %s799_s10, %s976_s10   ;;  %s757_s9 = sphi %s797_s9, %s975_s9  }
   0x9   : > { %s33_s17 = sadd.s32 1, %s773_s13  ;;  %s42_s18 = sadd.s32 1, %s765_s11 }
   0xa   : > { %p35_p0 = scmp.ge.s32.totalorder %s33_s17, 2  ;;  %p49_p1 = scmp.ne.s32.totalorder %s765_s11, %s761_s10 }
   0xb   : > { %p50_p2 = scmp.eq.s32.totalorder %s777_s14, 0  ;;  %p55_p3 = scmp.ne.s32.totalorder %s761_s10, %s757_s9 }
   0xc   : > { %s981_s17 = smov (%p35_p0, %s33_s17), 0  ;;  %p56_p5 = scmp.eq.s32.totalorder %s527_s15, 0 }
   0xd   : > { %p838_p4 = por %p50_p2, %p49_p1  ;;  %s37_s20 = ssub.s32 %s773_s13, %s981_s17 }
   0xe   : > { %p107_p6 = scmp.eq.s32.totalorder %s527_s15, 1  ;;  %p40_p7 = scmp.eq.s32.totalorder %s37_s20, 0 }
   0xf   : > { %p844_p8 = por %p56_p5, %p55_p3  ;;  %p113_p10 = scmp.eq.s32.totalorder %s528_s16, 1 }
  0x10   : > { %p848_p9 = por %p107_p6, %p49_p1  ;;  %p530_p12 = scmp.ge.s32.totalorder %s777_s14, 2 }
  0x11   : > { %s853_s23 = scalar_select %p40_p7, %s765_s11, %s42_s18  }
  0x12   : > { %p855_p11 = por %p113_p10, %p55_p3  ;;  %p566_p13 = scmp.lt.s32.totalorder %s777_s14, 2 }
  0x13   : > { %s133_s25 = sand.u32 1, %s765_s11   ;;  %s548_s27 = sshll.u32 %s773_s13, 3 }
  0x14   : > { %s531_s26 = sshll.u32 %s133_s25, 3  ;;  %s143_s30 = scalar_lea.hbm %s967_s0, %s548_s27 }
  0x15   : > { %s137_s3 = scalar_lea.vmem [#allocation4], %s531_s26  ;;  %s144_s5 = sshll.u32 %s143_s30, 4  ;;  %s145_s5 = int_to_ptr.hbm [resolvable:$true] %s144_s5 }
  0x16   : > { %s146_s4 = sshll.u32 %s137_s3, 4  ;;  %p868_p0 = pnand %p566_p13, %p838_p4  ;;  %s147_s4 = int_to_ptr.vmem [resolvable:$true] %s146_s4 }
  0x17   : > { %p536_p1 = scmp.ge.s32.totalorder %s777_s14, 1  ;;  %s134_s7 = scalar_lea.sflag [#allocation5], %s133_s25 }
  0x18   : > { %s779_s8 = smov 32   ;;  %s780_s15 = smov 2  }
  0x19   : > { %558 = dma.hbm_to_vmem [thread:$0]  (!%p868_p0), %s145_s5, 128, %s147_s4, %s134_s7, %s779_s8, %s779_s8, %s780_s15  }
  0x1a   : > { %p174_p2 = scmp.lt.s32.totalorder %s777_s14, 3  ;;  %s534_s16 = sshll.u32 %s133_s25, 1 }
  0x1b   : > { %s535_s18 = sshll.u32 %s773_s13, 1  ;;  %s160_s27 = scalar_lea.vmem [#allocation7], %s534_s16 }
  0x1c   : > { %p175_p3 = pnand %p536_p1, %p174_p2  ;;  %s165_s19 = scalar_lea.hbm %s968_s1, %s535_s18 }
  0x1d   : > { %s169_s28 = sshll.u32 %s160_s27, 4  ;;  %s167_s29 = sshll.u32 %s165_s19, 4  ;;  %s170_s28 = int_to_ptr.vmem [resolvable:$true] %s169_s28  ;;  %s168_s29 = int_to_ptr.hbm [resolvable:$true] %s167_s29 }
  0x1e   : > { %s157_s30 = scalar_lea.sflag [#allocation8], %s133_s25  ;;  %178 = sbr.rel (%p175_p3) target bundleno = 364 (0x16c), region = 28 }
  0x1f   : > { %561 = dma.hbm_to_vmem [thread:$0]  (!%p868_p0), %s168_s29, 32, %s170_s28, %s157_s30  }
  0x20   : > { %s883_s3 = sand.u32 (!%p175_p3), 1, %s761_s10  }
  0x21   : > { %s537_s4 = sshll.u32 (!%p175_p3), %s883_s3, 3  ;;  %s181_s5 = scalar_lea.sflag (!%p175_p3), [#allocation5], %s883_s3 }
  0x22   : > { %s184_s7 = scalar_lea.vmem (!%p175_p3), [#allocation4], %s537_s4 }
  0x23   : > { %744 = dma.done.wait (%p844_p8), %s181_s5, 128  }
  0x24   : > { %746 = vsyncadd (%p844_p8), %s181_s5, 4294967168  ;;  %s538_s25 = sshll.u32 %s883_s3, 1  ;;  %s191_s6 = scalar_lea.sflag [#allocation8], %s883_s3 }
  0x25   : > { %s893_s8 = scalar_lea.vmem [#allocation7], %s538_s25 }
  0x26   : > { %748 = dma.done.wait (%p844_p8), %s191_s6, 32  }
  0x27   : > { %750 = vsyncadd (%p844_p8), %s191_s6, 4294967264  ;;  %v781_v0 = vmov 0.0   ;;  %vm238_vm0 = vcmask 1041408   ;;  %v233_v1 = vld [vmem:[%s184_s7] sm:$0x3]  ;;  %vm346_vm5 = vcmask 1041409  }
  0x28   : > { %229 = vst [vmem:[#allocation3] sm:$0x3] %v781_v0  ;;  %v234_v2 = vld [vmem:[%s184_s7 + $0x2] sm:$0x3]  ;;  %v235_v3 = vld [vmem:[%s184_s7 + $0x4] sm:$0x3] }
  0x29   : > { %225 = vst [vmem:[#allocation2] sm:$0x3] %v781_v0  ;;  %v236_v4 = vld [vmem:[%s184_s7 + $0x6] sm:$0x3]  ;;  %v239_v5 = vsel %vm238_vm0, %v233_v1, -inf  ;;  %v240_v6 = vsel %vm238_vm0, %v234_v2, -inf }
  0x2a   : > { %226 = vst [vmem:[#allocation2 + $0x2] sm:$0x3] %v781_v0  ;;  %v241_v7 = vsel %vm238_vm0, %v235_v3, -inf  ;;  %v242_v8 = vsel %vm238_vm0, %v236_v4, -inf  ;;  %v243_v9 = vmax.f32 %v239_v5, %v240_v6  ;;  %v237_v31 = vld [vmem:[%s893_s8] sm:$0x3] }
  0x2b   : > { %227 = vst [vmem:[#allocation2 + $0x4] sm:$0x3] %v781_v0  ;;  %v244_v10 = vmax.f32 %v241_v7, %v242_v8  ;;  %vm273_vm1 = vcmp.eq.s32.totalorder %v237_v31, 0  ;;  %vm275_vm2 = vcmp.eq.s32.totalorder %v237_v31, 2  ;;  %vm274_vm3 = vcmp.eq.s32.totalorder %v237_v31, 1  ;;  %s539_s21 = sshll.u32 %s883_s3, 2 }
  0x2c   : > { %228 = vst [vmem:[#allocation2 + $0x6] sm:$0x3] %v781_v0  ;;  %vm276_vm4 = vcmp.eq.s32.totalorder %v237_v31, 3  ;;  %v540_v36 = vsel %vm273_vm1, 1.0, %v781_v0  ;;  %v542_v37 = vsel %vm275_vm2, 1.0, %v781_v0  ;;  %v541_v38 = vsel %vm274_vm3, 1.0, %v781_v0 }
  0x2d   : > { %230 = vst [vmem:[#allocation3 + $0x2] sm:$0x3] %v781_v0  ;;  %v245_v11 = vmax.f32 %v243_v9, %v244_v10  ;;  %v543_v39 = vsel %vm276_vm4, 1.0, %v781_v0  ;;  %vm348_vm6 = vcmask 1042434   ;;  %vm350_vm7 = vcmask 1043459   ;;  %s545_s15 = sshll.u32 %s769_s12, 2 }
  0x2e   : > { %231 = vst [vmem:[#allocation3 + $0x4] sm:$0x3] %v781_v0  ;;  %vm353_vm8 = vcmask 11264   ;;  %s418_s20 = scalar_lea.hbm %s969_s2, %s545_s15  ;;  %s220_s26 = scalar_lea.vmem [#allocation9], %s539_s21 }
  0x2f   : > { %232 = vst [vmem:[#allocation3 + $0x6] sm:$0x3] %v781_v0  ;;  %v246_v12 = vsub.f32 %v233_v1, %v245_v11  ;;  %v247_v13 = vsub.f32 %v234_v2, %v245_v11  ;;  %v248_v14 = vsub.f32 %v235_v3, %v245_v11  ;;  %v249_v15 = vsub.f32 %v236_v4, %v245_v11  ;;  %v301_v45 = vld [vmem:[#allocation3] sm:$0x3]  ;;  %s420_s19 = sshll.u32 %s220_s26, 4  ;;  %s422_s27 = sshll.u32 %s418_s20, 4  ;;  %s421_s19 = int_to_ptr.vmem [resolvable:$true] %s420_s19  ;;  %s423_s27 = int_to_ptr.hbm [resolvable:$true] %s422_s27 }
  0x30   : > { %v285_v42 = vld [vmem:[#allocation2] sm:$0x3]  ;;  %s408_s12 = scalar_lea.sflag [#allocation6], %s883_s3  ;;  %s705_s28 = sshra.s32 %s423_s27, 4  ;;  %s706_s28 = int_to_ptr.hbm [resolvable:$true] %s705_s28 }
  0x31   : > { %v250_v16 = vmul.f32 1.442695, %v246_v12  ;;  %v252_v17 = vmul.f32 1.442695, %v247_v13  ;;  %v254_v18 = vmul.f32 1.442695, %v248_v14  ;;  %p712_p7 = scmp.lt.s32.totalorder %s706_s28, %s969_s2 }
  0x32   : > { %v256_v19 = vmul.f32 1.442695, %v249_v15  ;;  %v286_v55 = vld [vmem:[#allocation2 + $0x2] sm:$0x3]  ;;  %v287_v60 = vld [vmem:[#allocation2 + $0x4] sm:$0x3] }
  0x33   : > { %619 = vpow2.f32 %v250_v16  ;;  %v288_v63 = vld [vmem:[#allocation2 + $0x6] sm:$0x3]  ;;  %s707_s29 = scalar_lea.hbm %s706_s28, 4  ;;  %s711_s5 = scalar_lea.hbm %s969_s2, 8 }
  0x34   : > { %621 = vpow2.f32 %v252_v17  ;;  %v302_v47 = vld [vmem:[#allocation3 + $0x2] sm:$0x3]  ;;  %p708_p4 = scmp.ne.s32.totalorder %s706_s28, %s707_s29  ;;  %p713_p8 = scmp.lt.s32.totalorder %s711_s5, %s707_s29 }
  0x35   : > { %623 = vpow2.f32 %v254_v18  ;;  %v303_v46 = vld [vmem:[#allocation3 + $0x4] sm:$0x3] }
  0x36   : > { %625 = vpow2.f32 %v256_v19  ;;  %v304_v52 = vld [vmem:[#allocation3 + $0x6] sm:$0x3]  ;;  %p709_p5 = pnand %p708_p4, %p848_p9  ;;  %p714_p10 = por %p713_p8, %p712_p7 }
  0x38   : > { %p710_p6 = pneg %p709_p5 }
  0x39   : > { %v620_v20 = vpop.eup %619 }
  0x3a   : > { %v622_v21 = vpop.eup %621  ;;  %v258_v22 = vsel %vm238_vm0, %v620_v20, 0.0  ;;  %p715_p13 = pnand %p714_p10, %p710_p6 }
  0x3b   : > { %v624_v23 = vpop.eup %623  ;;  %v259_v24 = vsel %vm238_vm0, %v622_v21, 0.0 }
  0x3c   : > { %v626_v25 = vpop.eup %625  ;;  %v260_v26 = vadd.f32 %v259_v24, %v258_v22  ;;  %v261_v27 = vsel %vm238_vm0, %v624_v23, 0.0  ;;  %v340_v22 = vlaneseq }
  0x3d   : > { %v263_v28 = vsel %vm238_vm0, %v626_v25, 0.0 }
  0x3e   : > { %v262_v29 = vadd.f32 %v261_v27, %v260_v26  ;;  %v341_v24 = vand.u32 127, %v340_v22 }
  0x40   : > { %v264_v30 = vadd.f32 %v263_v28, %v262_v29 }
  0x42   : > { %627 = vrcp.f32 %v264_v30 }
  0x48   : > { %v628_v32 = vpop.eup %627 }
  0x49   : > { %v266_v33 = vmul.f32 %v628_v32, %v264_v30 }
  0x4b   : > { %v267_v34 = vsub.f32 2.0, %v266_v33 }
  0x4d   : > { %v268_v35 = vmul.f32 %v628_v32, %v267_v34 }
  0x4f   : > { %v269_v40 = vmul.f32 %v620_v20, %v268_v35  ;;  %v271_v41 = vmul.f32 %v624_v23, %v268_v35  ;;  %v270_v43 = vmul.f32 %v622_v21, %v268_v35  ;;  %v272_v44 = vmul.f32 %v626_v25, %v268_v35 }
  0x51   : > { %v305_v48 = vadd.f32 %v540_v36, %v269_v40  ;;  %v307_v49 = vadd.f32 %v542_v37, %v271_v41  ;;  %v289_v50 = vsel %vm273_vm1, %v269_v40, 0.0  ;;  %v306_v51 = vadd.f32 %v541_v38, %v270_v43 }
  0x52   : > { %v293_v53 = vadd.f32 %v289_v50, %v285_v42  ;;  %v308_v54 = vadd.f32 %v543_v39, %v272_v44  ;;  %v290_v56 = vsel %vm274_vm3, %v270_v43, 0.0  ;;  %v291_v61 = vsel %vm275_vm2, %v271_v41, 0.0 }
  0x53   : > { %v309_v57 = vadd.f32 %v305_v48, %v301_v45  ;;  %v311_v58 = vadd.f32 %v307_v49, %v303_v46  ;;  %v310_v59 = vadd.f32 %v306_v51, %v302_v47  ;;  %v292_v0 = vsel %vm276_vm4, %v272_v44, 0.0 }
  0x54   : > { %297 = vst [vmem:[#allocation2] sm:$0x3] %v293_v53  ;;  %v312_v62 = vadd.f32 %v308_v54, %v304_v52  ;;  %v294_v1 = vadd.f32 %v290_v56, %v286_v55  ;;  %v295_v2 = vadd.f32 %v291_v61, %v287_v60  ;;  %v296_v3 = vadd.f32 %v292_v0, %v288_v63 }
  0x55   : > { %313 = vst [vmem:[#allocation3] sm:$0x3] %v309_v57 }
  0x56   : > { %315 = vst [vmem:[#allocation3 + $0x4] sm:$0x3] %v311_v58 }
  0x57   : > { %314 = vst [vmem:[#allocation3 + $0x2] sm:$0x3] %v310_v59 }
  0x58   : > { %316 = vst [vmem:[#allocation3 + $0x6] sm:$0x3] %v312_v62 }
  0x59   : > { %298 = vst [vmem:[#allocation2 + $0x2] sm:$0x3] %v294_v1 }
  0x5a   : > { %299 = vst [vmem:[#allocation2 + $0x4] sm:$0x3] %v295_v2 }
  0x5b   : > { %v320_v4 = vld [vmem:[#allocation2] sm:$0x3]  ;;  %300 = vst [vmem:[#allocation2 + $0x6] sm:$0x3] %v296_v3 }
  0x5c   : > { %v357_v5 = vld [vmem:[#allocation3] sm:$0x3]  ;;  %v324_v6 = vsel %vm238_vm0, %v320_v4, 0.0 }
  0x5d   : > { %v361_v7 = vsel %vm238_vm0, %v357_v5, 0.0  ;;  %v359_v8 = vld [vmem:[#allocation3 + $0x4] sm:$0x3]  ;;  %325 = vadd.xlane.f32.xlu2 %v324_v6 }
  0x5e   : > { %362 = vadd.xlane.f32.xlu0 %v361_v7  ;;  %v367_v9 = vsel %vm238_vm0, %v359_v8, 0.0  ;;  %v358_v10 = vld [vmem:[#allocation3 + $0x2] sm:$0x3] }
  0x5f   : > { %368 = vadd.xlane.f32.xlu1 %v367_v9  ;;  %v360_v12 = vld [vmem:[#allocation3 + $0x6] sm:$0x3]  ;;  %v364_v14 = vsel %vm238_vm0, %v358_v10, 0.0 }
  0x60   : > { %v321_v11 = vld [vmem:[#allocation2 + $0x2] sm:$0x3]  ;;  %v370_v15 = vsel %vm238_vm0, %v360_v12, 0.0 }
  0x61   : > { %v327_v13 = vsel %vm238_vm0, %v321_v11, 0.0  ;;  %v322_v16 = vld [vmem:[#allocation2 + $0x4] sm:$0x3] }
  0x62   : > { %v323_v17 = vld [vmem:[#allocation2 + $0x6] sm:$0x3]  ;;  %v330_v18 = vsel %vm238_vm0, %v322_v16, 0.0 }
  0x63   : > { %v333_v19 = vsel %vm238_vm0, %v323_v17, 0.0 }
  0x65   : > { %328 = vadd.xlane.f32.xlu2 %v327_v13 }
  0x66   : > { %365 = vadd.xlane.f32.xlu0 %v364_v14 }
  0x67   : > { %371 = vadd.xlane.f32.xlu1 %v370_v15 }
  0x6e   : > { %331 = vadd.xlane.f32.xlu0 %v330_v18 }
  0x6f   : > { %334 = vadd.xlane.f32.xlu1 %v333_v19 }
  0xd0   : > { %v326_v20 = vpop.xlane.xlu2 %325 }
  0xd1   : > { %v363_v21 = vpop.xlane.xlu0 %362  ;;  %v342_v33 = vperm.slane %v326_v20, %v341_v24 }
  0xd2   : > { %v369_v23 = vpop.xlane.xlu1 %368  ;;  %v377_v26 = vperm.slane %v363_v21, %v341_v24 }
  0xd3   : > { %v379_v30 = vperm.slane %v369_v23, %v341_v24 }
  0xd8   : > { %v329_v29 = vpop.xlane.xlu2 %328 }
  0xd9   : > { %v366_v25 = vpop.xlane.xlu0 %365  ;;  %v343_v35 = vperm.slane %v329_v29, %v341_v24 }
  0xda   : > { %v378_v27 = vperm.slane %v366_v25, %v341_v24  ;;  %v372_v28 = vpop.xlane.xlu1 %371 }
  0xdb   : > { %v380_v31 = vperm.slane %v372_v28, %v341_v24  ;;  %v347_v38 = vsel %vm346_vm5, %v343_v35, %v342_v33 }
  0xdc   : > { %v381_v32 = vsel %vm346_vm5, %v378_v27, %v377_v26 }
  0xdd   : > { %v382_v34 = vsel %vm348_vm6, %v379_v30, %v381_v32 }
  0xde   : > { %v383_v36 = vsel %vm350_vm7, %v380_v31, %v382_v34 }
  0xdf   : > { %v385_v37 = vsel %vm353_vm8, %v383_v36, 0.0 }
  0xe0   : > { %386 = vadd.xlane.f32.xlu2 %v385_v37 }
  0xe1   : > { %v332_v39 = vpop.xlane.xlu0 %331 }
  0xe2   : > { %v344_v40 = vperm.slane %v332_v39, %v341_v24  ;;  %v335_v41 = vpop.xlane.xlu1 %334 }
  0xe3   : > { %v345_v42 = vperm.slane %v335_v41, %v341_v24 }
  0xe4   : > { %v349_v43 = vsel %vm348_vm6, %v344_v40, %v347_v38 }
  0xe5   : > { %v351_v44 = vsel %vm350_vm7, %v345_v42, %v349_v43 }
  0xe6   : > { %v354_v45 = vsel %vm353_vm8, %v351_v44, 0.0 }
  0xe7   : > { %355 = vadd.xlane.f32.xlu0 %v354_v45 }
 0x153   : > { %v387_v46 = vpop.xlane.xlu2 %386 }
 0x154   : > { %v390_v47 = vadd.f32 1e-06, %v387_v46 }
 0x156   : > { %629 = vrcp.f32 %v390_v47  ;;  %v402_v52 = vand.u32 2147483648, %v390_v47  ;;  %v400_v55 = vand.u32 2147483647, %v390_v47  ;;  %vm396_vm10 = vweird.f32 %v390_v47 }
 0x158   : > { %v403_v57 = vor.u32 1.1754944e-38, %v402_v52  ;;  %vm401_vm12 = vcmp.eq.f32.partialorder %v400_v55, 8.507059e+37 }
 0x15a   : > { %v356_v50 = vpop.xlane.xlu0 %355 }
 0x15b   : > { %v388_v53 = vmul.f32 2.0, %v356_v50 }
 0x15c   : > { %v630_v48 = vpop.eup %629 }
 0x15d   : > { %v392_v49 = vmul.f32 %v630_v48, %v390_v47  ;;  %vm397_vm9 = vweird.f32 %v630_v48  ;;  %v389_v58 = vadd.f32 1e-06, %v388_v53 }
 0x15e   : > { %vm398_vm11 = vmor %vm396_vm10, %vm397_vm9 }
 0x15f   : > { %v393_v51 = vsub.f32 1.0, %v392_v49 }
 0x161   : > { %v394_v54 = vmul.f32 %v630_v48, %v393_v51 }
 0x163   : > { %v395_v56 = vadd.f32 %v630_v48, %v394_v54 }
 0x165   : > { %v399_v59 = vsel %vm398_vm11, %v630_v48, %v395_v56 }
 0x166   : > { %v404_v60 = vsel %vm401_vm12, %v403_v57, %v399_v59 }
 0x167   : > { %v405_v61 = vmul.f32 %v404_v60, %v389_v58 }
 0x169   : > { %406 = vst [vmem:[%s220_s26] sm:$0xf] %v405_v61 }
 0x16a   : > { %718 = shalt.err (!%p715_p13)
}
 0x16b   : > { %553 = dma.vmem_to_hbm [thread:$0]  (%p848_p9), %s421_s19, 64, %s423_s27, %s408_s12  }
 0x16c PF: > { %s434_s3 = sand.u32 1, %s757_s9   ;;  %p563_p0 = pnand %p530_p12, %p855_p11 }
 0x16d   : > { %s435_s6 = scalar_lea.sflag [#allocation6], %s434_s3 }
 0x16e   : > { %p564_p1 = pneg %p563_p0 }
 0x170   : > { %752 = dma.done.wait (%p564_p1), %s435_s6, 64  }
 0x171   : > { %754 = vsyncadd (%p564_p1), %s435_s6, 4294967232  ;;  %s21_s14 = sadd.s32 1, %s777_s14   ;;  %s975_s9 = smov %s761_s10 }
 0x172   : > { %p18_p2 = scmp.ge.s32.totalorder %s21_s14, 4   ;;  %s976_s10 = smov %s765_s11 }
 0x173   : > { %s977_s11 = smov %s853_s23  ;;  %s978_s12 = smov %s773_s13 }
 0x174   : > { %s979_s13 = smov %s981_s17  ;;  %20 = sbr.rel (!%p18_p2) target bundleno = 8 (0x8), region = 94 }
 0x179   :  { %441 = vsyncpa [#allocation5], 1 }
 0x17a   :  { %443 = vsyncpa [#allocation5 + $0x1], 1 }
 0x17b   :  { %444 = vsyncpa [#allocation8], 1 }
 0x17c   :  { %446 = vsyncpa [#allocation8 + $0x1], 1 }
 0x17d   :  { %447 = vsyncpa [#allocation6], 1 }
 0x17e   :  { %449 = vsyncpa [#allocation6 + $0x1], 1 }

</bundles_post_ra>
